<compile_context>
chip_gen: v6e
topology: v6e:2x2x1
jax: 0.10.0
libtpu: 0.0.40
codegen_flags: <defaults>
</compile_context>

<pallas_src>
import functools

import jax
import jax.numpy as jnp
from jax.experimental import pallas as pl
from jax.experimental.pallas import tpu as pltpu

_MIB = 1024 * 1024


def _round_up(a: int, b: int) -> int:
    return (a + b - 1) // b * b


def _vmem_plan():
    """(vmem_limit_bytes, tiling_budget_bytes), generation-aware."""
    try:
        cap = pltpu.get_tpu_info().vmem_capacity_bytes
    except Exception:
        cap = 64 * _MIB  # conservative fallback (v7x-sized)
    # leave headroom for compiler-internal scratch; cap below physical VMEM.
    vmem_limit = max(32 * _MIB, min(cap - 12 * _MIB, 104 * _MIB))
    budget = int(vmem_limit * 0.85)
    return int(vmem_limit), int(budget)


_ACT2FN = {
    "silu": lambda x: x * jax.nn.sigmoid(x),
    "swish": lambda x: x * jax.nn.sigmoid(x),
    "gelu": jax.nn.gelu,
    "relu": lambda x: jnp.maximum(x, 0.0),
    "sigmoid": jax.nn.sigmoid,
}
# TODO(synk): only the common ACT2FN entries above are supported in-kernel.


# --------------------------------------------------------------------------
# Kernels
# --------------------------------------------------------------------------
def glu_mlp_resident_kernel(x_ref, wgv_ref, wo_ref, o_ref, *, act_fn):
    # x_ref: (tm, H); wgv_ref: (H, 2*Mp) = [gate cols | value cols];
    # wo_ref: (Mp, H); o_ref: (tm, H). Weights resident (constant index_map).
    mp = wo_ref.shape[0]
    fused = jnp.dot(x_ref[...], wgv_ref[...], preferred_element_type=jnp.float32)
    gate = fused[:, :mp]
    value = fused[:, mp:]
    cdt = wo_ref.dtype
    h = act_fn(gate).astype(cdt) * value.astype(cdt)
    o_ref[...] = jnp.dot(h, wo_ref[...],
                         preferred_element_type=jnp.float32).astype(o_ref.dtype)


def glu_mlp_stream_kernel(x_ref, wgv_ref, wo_ref, o_ref, acc_ref, *, act_fn):
    # x_ref: (tm, H); wgv_ref: (H, 2*tkm) = [gate chunk | value chunk];
    # wo_ref: (tkm, H); o_ref: (tm, H) resident across m; acc_ref: (tm, H) f32.
    m = pl.program_id(1)
    tkm = wo_ref.shape[0]

    fused = jnp.dot(x_ref[...], wgv_ref[...], preferred_element_type=jnp.float32)
    gate = fused[:, :tkm]
    value = fused[:, tkm:]
    cdt = wo_ref.dtype
    h = act_fn(gate).astype(cdt) * value.astype(cdt)
    part = jnp.dot(h, wo_ref[...], preferred_element_type=jnp.float32)

    @pl.when(m == 0)
    def _init():
        acc_ref[...] = part          # write-through: no zero-init round trip

    @pl.when(m > 0)
    def _accum():
        acc_ref[...] += part

    @pl.when(m == pl.num_programs(1) - 1)
    def _finalize():
        o_ref[...] = acc_ref[...].astype(o_ref.dtype)


# --------------------------------------------------------------------------
# One-time weight preparation (hoisted out of the forward pass)
# --------------------------------------------------------------------------
def prepare_glu_mlp_weights(w_in, w_out, *, tm_max=512, mode=None, tkm=None,
                            activation="silu"):
    """Relayout PyTorch-layout GluMlp weights once and pick a tiling plan.

    w_in:  (2M, H)  nn.Linear (out, in); rows [:M] = gate, [M:] = value
    w_out: (H, M)   nn.Linear (out, in)
    Returns (wgv, wo, plan).
    """
    two_m, H = w_in.shape
    M = two_m // 2
    db = w_in.dtype.itemsize
    vmem_limit, budget = _vmem_plan()

    wg = jnp.transpose(w_in[:M, :])      # (H, M)
    wv = jnp.transpose(w_in[M:, :])      # (H, M)
    wo = jnp.transpose(w_out)            # (M, H)

    if mode is None:
        # resident estimate: weights (conservatively double-buffered), x/out
        # double-buffered at tm_max, plus f32 fused/out temporaries.
        resident_bytes = (2 * 3 * H * M * db
                          + 4 * tm_max * H * db
                          + tm_max * (2 * M + H) * 4)
        mode = "resident" if resident_bytes <= budget else "stream"

    if mode == "resident":
        m_pad = _round_up(M, 128)
        if m_pad != M:
            wg = jnp.pad(wg, ((0, 0), (0, m_pad - M)))
            wv = jnp.pad(wv, ((0, 0), (0, m_pad - M)))
            wo = jnp.pad(wo, ((0, m_pad - M), (0, 0)))
        wgv = jnp.concatenate([wg, wv], axis=-1)           # (H, 2*Mp)
        plan = dict(mode="resident", tm_max=tm_max, tkm=m_pad,
                    vmem_limit=vmem_limit, activation=activation)
        return wgv, wo, plan

    # ---- streaming plan: pick (tm, tkm) that fit the VMEM budget ----
    if tkm is None:
        chosen = None
        for cand_tm in (tm_max, 256, 128):
            for cand_tkm in (512, 384, 256, 128):
                step = (2 * (2 * H * cand_tkm) * db        # wgv, double-buffered
                        + 2 * (cand_tkm * H) * db           # wo,  double-buffered
                        + 4 * cand_tm * H * db              # x + out, double-buffered
                        + cand_tm * H * 4                   # f32 accumulator
                        + cand_tm * 2 * cand_tkm * 4)       # f32 fused temporary
                if step <= budget:
                    chosen = (cand_tm, cand_tkm)
                    break
            if chosen is not None:
                break
        if chosen is None:
            # TODO(synk): tile H as well for extreme hidden sizes.
            chosen = (128, 128)
        tm_max, tkm = chosen
    tkm = min(max(128, (tkm // 128) * 128), _round_up(M, 128))

    m_pad = _round_up(M, tkm)
    if m_pad != M:  # zero-pad is exact: act(0)*0 = 0, padded wo rows are 0
        wg = jnp.pad(wg, ((0, 0), (0, m_pad - M)))
        wv = jnp.pad(wv, ((0, 0), (0, m_pad - M)))
        wo = jnp.pad(wo, ((0, m_pad - M), (0, 0)))
    nc = m_pad // tkm
    # chunk-interleave so each reduction step reads one contiguous (H, 2*tkm)
    # block: [gate chunk m | value chunk m].
    wgv = jnp.stack([wg.reshape(H, nc, tkm),
                     wv.reshape(H, nc, tkm)], axis=2).reshape(H, 2 * m_pad)
    plan = dict(mode="stream", tm_max=tm_max, tkm=tkm,
                vmem_limit=vmem_limit, activation=activation)
    return wgv, wo, plan


# --------------------------------------------------------------------------
# Forward pass
# --------------------------------------------------------------------------
@functools.partial(jax.jit,
                   static_argnames=("mode", "tm_max", "tkm", "vmem_limit",
                                    "activation"))
def _glu_mlp_impl(x, wgv, wo, *, mode, tm_max, tkm, vmem_limit, activation):
    H = x.shape[-1]
    lead_shape = x.shape[:-1]
    x2d = x.reshape(-1, H)
    N = x2d.shape[0]
    m_pad = wo.shape[0]
    act_fn = _ACT2FN[activation]

    # token tiling: >=128 rows (multiple of every sublane packing), zero-padded.
    if N <= tm_max:
        tm = max(128, _round_up(N, 128))
        n_pad = tm
    else:
        tm = tm_max
        n_pad = _round_up(N, tm)
    if n_pad != N:
        x2d = jnp.pad(x2d, ((0, n_pad - N), (0, 0)))

    db = x.dtype.itemsize
    n_tiles = n_pad // tm
    weight_passes = 1 if mode == "resident" else n_tiles
    cost = pl.CostEstimate(
        flops=6 * N * H * m_pad,
        transcendentals=N * m_pad,
        bytes_accessed=2 * N * H * db + 3 * H * m_pad * db * weight_passes,
    )

    if mode == "resident":
        out2d = pl.pallas_call(
            functools.partial(glu_mlp_resident_kernel, act_fn=act_fn),
            out_shape=jax.ShapeDtypeStruct((n_pad, H), x.dtype),
            grid_spec=pltpu.PrefetchScalarGridSpec(
                num_scalar_prefetch=0,
                grid=(n_tiles,),
                in_specs=[
                    pl.BlockSpec((tm, H), lambda i: (i, 0)),
                    # constant index_maps -> weights stay resident in VMEM
                    pl.BlockSpec(wgv.shape, lambda i: (0, 0)),
                    pl.BlockSpec(wo.shape, lambda i: (0, 0)),
                ],
                out_specs=pl.BlockSpec((tm, H), lambda i: (i, 0)),
            ),
            compiler_params=pltpu.CompilerParams(
                dimension_semantics=("parallel",),
                vmem_limit_bytes=vmem_limit,
            ),
            cost_estimate=cost,
        )(x2d, wgv, wo)
    else:
        out2d = pl.pallas_call(
            functools.partial(glu_mlp_stream_kernel, act_fn=act_fn),
            out_shape=jax.ShapeDtypeStruct((n_pad, H), x.dtype),
            grid_spec=pltpu.PrefetchScalarGridSpec(
                num_scalar_prefetch=0,
                grid=(n_tiles, m_pad // tkm),
                in_specs=[
                    pl.BlockSpec((tm, H), lambda i, m: (i, 0)),
                    pl.BlockSpec((H, 2 * tkm), lambda i, m: (0, m)),
                    pl.BlockSpec((tkm, H), lambda i, m: (m, 0)),
                ],
                out_specs=pl.BlockSpec((tm, H), lambda i, m: (i, 0)),
                scratch_shapes=[pltpu.VMEM((tm, H), jnp.float32)],
            ),
            compiler_params=pltpu.CompilerParams(
                dimension_semantics=("parallel", "arbitrary"),
                vmem_limit_bytes=vmem_limit,
            ),
            cost_estimate=cost,
        )(x2d, wgv, wo)

    if n_pad != N:
        out2d = out2d[:N]
    return out2d.reshape(*lead_shape, H)


def glu_mlp(x, wgv, wo, plan):
    """Forward pass. `wgv`, `wo`, `plan` come from prepare_glu_mlp_weights."""
    return _glu_mlp_impl(x, wgv, wo, mode=plan["mode"], tm_max=plan["tm_max"],
                         tkm=plan["tkm"], vmem_limit=plan["vmem_limit"],
                         activation=plan["activation"])


def glu_mlp_ref(x, w_in, w_out, activation="silu"):
    """Pure-JAX reference mirroring the PyTorch forward (original layouts)."""
    M = w_in.shape[0] // 2
    fused = jnp.einsum("...h,oh->...o", x, w_in)
    gate, value = fused[..., :M], fused[..., M:]
    h = _ACT2FN[activation](gate) * value
    return jnp.einsum("...m,hm->...h", h, w_out)


if __name__ == "__main__":
    key = jax.random.PRNGKey(0)

    # --- test 1: small canonical shapes, resident-weight path ---------------
    B, S, H, Mm = 2, 8, 32, 64
    kx, kwin, kwout, key = jax.random.split(key, 4)
    x = jax.random.normal(kx, (B, S, H), dtype=jnp.float32)
    w_in = jax.random.normal(kwin, (2 * Mm, H), dtype=jnp.float32) * 0.05
    w_out = jax.random.normal(kwout, (H, Mm), dtype=jnp.float32) * 0.05

    wgv1, wo1, plan1 = prepare_glu_mlp_weights(w_in, w_out)
    out = jax.block_until_ready(glu_mlp(x, wgv1, wo1, plan1))
    ref = glu_mlp_ref(x, w_in, w_out)
    assert out.shape == (B, S, H)
    assert jnp.allclose(out, ref, atol=1e-3, rtol=1e-3), "mismatch (test 1)"

    # --- test 2: ragged token count + forced streaming / M-reduction path ---
    B2, S2, H2, M2 = 1, 20, 128, 256
    kx, kwin, kwout, key = jax.random.split(key, 4)
    x2 = jax.random.normal(kx, (B2, S2, H2), dtype=jnp.float32)
    w_in2 = jax.random.normal(kwin, (2 * M2, H2), dtype=jnp.float32) * 0.03
    w_out2 = jax.random.normal(kwout, (H2, M2), dtype=jnp.float32) * 0.03

    wgv2, wo2, plan2 = prepare_glu_mlp_weights(
        w_in2, w_out2, mode="stream", tkm=128, tm_max=256)
    out2 = jax.block_until_ready(glu_mlp(x2, wgv2, wo2, plan2))
    ref2 = glu_mlp_ref(x2, w_in2, w_out2)
    assert out2.shape == (B2, S2, H2)
    assert jnp.allclose(out2, ref2, atol=1e-3, rtol=1e-3), "mismatch (test 2)"

    print("KERNEL_OK")
</pallas_src>

<mosaic_0001>
module attributes {stable_mosaic.version = 11 : i64} {
  func.func @glu_mlp_resident_kernel(%arg0: i32, %arg1: memref<128x32xf32, #tpu.memory_space<vmem>>, %arg2: memref<32x256xf32, #tpu.memory_space<vmem>>, %arg3: memref<128x32xf32, #tpu.memory_space<vmem>>, %arg4: memref<128x32xf32, #tpu.memory_space<vmem>>) attributes {dimension_semantics = [#tpu.dimension_semantics<parallel>], iteration_bounds = array<i64: 1>, scalar_prefetch = 0 : i64, scratch_operands = 0 : i64, tpu.core_type = #tpu.core_type<tc>, window_params = [{transform_indices = @transform_0, window_bounds = array<i64: 128, 32>}, {pipeline_mode = #tpu.pipeline_mode<synchronous>, transform_indices = @transform_1, window_bounds = array<i64: 32, 256>}, {pipeline_mode = #tpu.pipeline_mode<synchronous>, transform_indices = @transform_2, window_bounds = array<i64: 128, 32>}, {transform_indices = @transform_3, window_bounds = array<i64: 128, 32>}]} {
    %c0 = arith.constant 0 : index
    %c0_0 = arith.constant 0 : index
    %0 = vector.load %arg1[%c0, %c0_0] : memref<128x32xf32, #tpu.memory_space<vmem>>, vector<128x32xf32>
    %c0_1 = arith.constant 0 : index
    %c0_2 = arith.constant 0 : index
    %1 = vector.load %arg2[%c0_1, %c0_2] : memref<32x256xf32, #tpu.memory_space<vmem>>, vector<32x256xf32>
    %cst = arith.constant dense<0.000000e+00> : vector<128x256xf32>
    %2 = tpu.matmul %0, %1, %cst {dimension_numbers = #tpu.dot_dimension_numbers<[1], [0], [0], [1], [0, 0, 1, 1], [], []>} : vector<128x32xf32>, vector<32x256xf32>, vector<128x256xf32> -> vector<128x256xf32>
    %3 = vector.extract_strided_slice %2 {offsets = [0, 0], sizes = [128, 128], strides = [1, 1]} : vector<128x256xf32> to vector<128x128xf32>
    %4 = vector.extract_strided_slice %2 {offsets = [0, 128], sizes = [128, 128], strides = [1, 1]} : vector<128x256xf32> to vector<128x128xf32>
    %5 = arith.negf %3 : vector<128x128xf32>
    %6 = math.exp %5 : vector<128x128xf32>
    %cst_3 = arith.constant 1.000000e+00 : f32
    %7 = vector.broadcast %cst_3 : f32 to vector<128x128xf32>
    %8 = arith.addf %7, %6 : vector<128x128xf32>
    %9 = arith.divf %7, %8 : vector<128x128xf32>
    %10 = arith.mulf %3, %9 : vector<128x128xf32>
    %11 = arith.mulf %10, %4 : vector<128x128xf32>
    %c0_4 = arith.constant 0 : index
    %c0_5 = arith.constant 0 : index
    %12 = vector.load %arg3[%c0_4, %c0_5] : memref<128x32xf32, #tpu.memory_space<vmem>>, vector<128x32xf32>
    %cst_6 = arith.constant dense<0.000000e+00> : vector<128x32xf32>
    %13 = tpu.matmul %11, %12, %cst_6 {dimension_numbers = #tpu.dot_dimension_numbers<[1], [0], [0], [1], [0, 0, 1, 1], [], []>} : vector<128x128xf32>, vector<128x32xf32>, vector<128x32xf32> -> vector<128x32xf32>
    %c0_7 = arith.constant 0 : index
    %c0_8 = arith.constant 0 : index
    %14 = vector.load %arg4[%c0_7, %c0_8] : memref<128x32xf32, #tpu.memory_space<vmem>>, vector<128x32xf32>
    tpu.vector_store %arg4[%c0_7, %c0_8], %13 {strides = array<i32>} : memref<128x32xf32, #tpu.memory_space<vmem>>, vector<128x32xf32>,
    return
  }
  func.func @transform_0(%arg0: i32) -> (i32, i32) {
    %c0_i32 = arith.constant 0 : i32
    %c0_i32_0 = arith.constant 0 : i32
    return %arg0, %c0_i32 : i32, i32
  }
  func.func @transform_1(%arg0: i32) -> (i32, i32) {
    %c0_i32 = arith.constant 0 : i32
    %c0_i32_0 = arith.constant 0 : i32
    %c0_i32_1 = arith.constant 0 : i32
    return %c0_i32, %c0_i32_0 : i32, i32
  }
  func.func @transform_2(%arg0: i32) -> (i32, i32) {
    %c0_i32 = arith.constant 0 : i32
    %c0_i32_0 = arith.constant 0 : i32
    %c0_i32_1 = arith.constant 0 : i32
    return %c0_i32, %c0_i32_0 : i32, i32
  }
  func.func @transform_3(%arg0: i32) -> (i32, i32) {
    %c0_i32 = arith.constant 0 : i32
    %c0_i32_0 = arith.constant 0 : i32
    return %arg0, %c0_i32 : i32, i32
  }
}

</mosaic_0001>

<bundles_post_ra>
// kernel: _glu_mlp_impl.1
= control target key start
LH: loop header
LB: loop body
LE: loop exit
PB: predicated region body
PF: predicated region fallthrough
CT: control target
= control target key end

     0   :  { %v742_v3 = vmov 0.0   ;;  %vm38_vm0 = vcmask 261120   ;;  %s1040_s1 = inlined_call_operand.vmem [shape: f32[32,256], index: 1, kind: input, shape index: {}]   ;;  %s1041_s0 = inlined_call_operand.vmem [shape: f32[128,32], index: 0, kind: input, shape index: {}]   ;;  %s1042_s2 = inlined_call_operand.vmem [shape: f32[128,32], index: 2, kind: input, shape index: {}]   ;;  %s1043_s3 = inlined_call_operand.vmem [shape: f32[128,32], index: 3, kind: output, shape index: {}]  }
   0x1   :  { %v37_v0 = vld [vmem:[%s1040_s1 + $0x38] sm:$0xff]  ;;  %v36_v1 = vld [vmem:[%s1040_s1 + $0x30] sm:$0xff]  ;;  %v35_v2 = vld [vmem:[%s1040_s1 + $0x28] sm:$0xff]  ;;  %151 = vmatprep.mubr.f32.mxu0 %v742_v3 }
   0x2   :  { %111 = vmatprep.subr.mxu0 %v37_v0  ;;  %v34_v4 = vld [vmem:[%s1040_s1 + $0x20] sm:$0xff]  ;;  %v33_v5 = vld [vmem:[%s1040_s1 + $0x18] sm:$0xff]  ;;  %v32_v6 = vld [vmem:[%s1040_s1 + $0x10] sm:$0xff] }
   0x3   :  { %112 = vmatpush1.msra.mxu0 %v36_v1  ;;  %v31_v7 = vld [vmem:[%s1040_s1 + $0x8] sm:$0xff]  ;;  %v30_v8 = vld [vmem:[%s1040_s1] sm:$0xff]  ;;  %v16_v11 = vld [vmem:[%s1041_s0 + $0x10] sm:$0xff] }
   0x4   :  { %113 = vmatprep.subr.mxu0 %v35_v2  ;;  %v14_v9 = vld [vmem:[%s1041_s0] sm:$0xff]  ;;  %v15_v10 = vld [vmem:[%s1041_s0 + $0x8] sm:$0xff]  ;;  %v17_v12 = vld [vmem:[%s1041_s0 + $0x18] sm:$0xff] }
   0x5   :  { %114 = vmatpush1.msra.mxu0 %v34_v4  ;;  %v18_v13 = vld [vmem:[%s1041_s0 + $0x20] sm:$0xff]  ;;  %v19_v14 = vld [vmem:[%s1041_s0 + $0x28] sm:$0xff]  ;;  %v20_v15 = vld [vmem:[%s1041_s0 + $0x30] sm:$0xff] }
   0x6   :  { %115 = vmatprep.subr.mxu0 %v33_v5  ;;  %v21_v16 = vld [vmem:[%s1041_s0 + $0x38] sm:$0xff]  ;;  %v22_v17 = vld [vmem:[%s1041_s0 + $0x40] sm:$0xff]  ;;  %v23_v18 = vld [vmem:[%s1041_s0 + $0x48] sm:$0xff] }
   0x7   :  { %116 = vmatpush1.msra.mxu0 %v32_v6  ;;  %v24_v19 = vld [vmem:[%s1041_s0 + $0x50] sm:$0xff]  ;;  %v25_v20 = vld [vmem:[%s1041_s0 + $0x58] sm:$0xff]  ;;  %v26_v21 = vld [vmem:[%s1041_s0 + $0x60] sm:$0xff] }
   0x8   :  { %117 = vmatprep.subr.mxu0 %v31_v7  ;;  %v27_v22 = vld [vmem:[%s1041_s0 + $0x68] sm:$0xff]  ;;  %v28_v23 = vld [vmem:[%s1041_s0 + $0x70] sm:$0xff]  ;;  %v29_v24 = vld [vmem:[%s1041_s0 + $0x78] sm:$0xff] }
   0x9   :  { %118 = vmatpush1.msra.mxu0 %v30_v8  ;;  %v391_v25 = vld [vmem:[%s1042_s2 + $0x78] sm:$0xff]  ;;  %v390_v26 = vld [vmem:[%s1042_s2 + $0x70] sm:$0xff]  ;;  %v389_v27 = vld [vmem:[%s1042_s2 + $0x68] sm:$0xff] }
   0xa   :  { %557 = vmatmul.mubr.msk.f32.vlgmr.msra.gmra.mxu0 %vm38_vm0, %v14_v9  ;;  %621 = vmatprep.subr.mxu1 %v391_v25  ;;  %v388_v28 = vld [vmem:[%s1042_s2 + $0x60] sm:$0xff]  ;;  %v387_v29 = vld [vmem:[%s1042_s2 + $0x58] sm:$0xff]  ;;  %v386_v30 = vld [vmem:[%s1042_s2 + $0x50] sm:$0xff] }
   0xb   :  { %157 = vmatprep.mubr.f32.mxu0 %v742_v3  ;;  %622 = vmatpush3.msra.mxu1 %v391_v25  ;;  %v385_v31 = vld [vmem:[%s1042_s2 + $0x48] sm:$0xff]  ;;  %v384_v32 = vld [vmem:[%s1042_s2 + $0x40] sm:$0xff]  ;;  %v383_v33 = vld [vmem:[%s1042_s2 + $0x38] sm:$0xff] }
   0xc   :  { %623 = vmatprep.subr.mxu1 %v390_v26  ;;  %v382_v34 = vld [vmem:[%s1042_s2 + $0x30] sm:$0xff]  ;;  %v381_v35 = vld [vmem:[%s1042_s2 + $0x28] sm:$0xff]  ;;  %v380_v36 = vld [vmem:[%s1042_s2 + $0x20] sm:$0xff] }
   0xd   :  { %624 = vmatpush3.msra.mxu1 %v390_v26  ;;  %v379_v37 = vld [vmem:[%s1042_s2 + $0x18] sm:$0xff]  ;;  %v378_v38 = vld [vmem:[%s1042_s2 + $0x10] sm:$0xff]  ;;  %v377_v39 = vld [vmem:[%s1042_s2 + $0x8] sm:$0xff] }
   0xe   :  { %558 = vmatmul.mubr.msk.f32.gmra.mxu0 %vm38_vm0, %v15_v10  ;;  %625 = vmatprep.subr.mxu1 %v389_v27  ;;  %v376_v40 = vld [vmem:[%s1042_s2] sm:$0xff] }
   0xf   :  { %163 = vmatprep.mubr.f32.mxu0 %v742_v3  ;;  %626 = vmatpush3.msra.mxu1 %v389_v27 }
  0x10   :  { %627 = vmatprep.subr.mxu1 %v388_v28 }
  0x11   :  { %628 = vmatpush3.msra.mxu1 %v388_v28 }
  0x12   :  { %559 = vmatmul.mubr.msk.f32.gmra.mxu0 %vm38_vm0, %v16_v11  ;;  %629 = vmatprep.subr.mxu1 %v387_v29 }
  0x13   :  { %169 = vmatprep.mubr.f32.mxu0 %v742_v3  ;;  %630 = vmatpush3.msra.mxu1 %v387_v29 }
  0x14   :  { %631 = vmatprep.subr.mxu1 %v386_v30 }
  0x15   :  { %632 = vmatpush3.msra.mxu1 %v386_v30 }
  0x16   :  { %560 = vmatmul.mubr.msk.f32.gmra.mxu0 %vm38_vm0, %v17_v12  ;;  %633 = vmatprep.subr.mxu1 %v385_v31 }
  0x17   :  { %175 = vmatprep.mubr.f32.mxu0 %v742_v3  ;;  %634 = vmatpush3.msra.mxu1 %v385_v31 }
  0x18   :  { %635 = vmatprep.subr.mxu1 %v384_v32 }
  0x19   :  { %636 = vmatpush3.msra.mxu1 %v384_v32 }
  0x1a   :  { %561 = vmatmul.mubr.msk.f32.gmra.mxu0 %vm38_vm0, %v18_v13  ;;  %637 = vmatprep.subr.mxu1 %v383_v33 }
  0x1b   :  { %181 = vmatprep.mubr.f32.mxu0 %v742_v3  ;;  %638 = vmatpush3.msra.mxu1 %v383_v33 }
  0x1c   :  { %639 = vmatprep.subr.mxu1 %v382_v34 }
  0x1d   :  { %640 = vmatpush3.msra.mxu1 %v382_v34 }
  0x1e   :  { %562 = vmatmul.mubr.msk.f32.gmra.mxu0 %vm38_vm0, %v19_v14  ;;  %641 = vmatprep.subr.mxu1 %v381_v35 }
  0x1f   :  { %187 = vmatprep.mubr.f32.mxu0 %v742_v3  ;;  %642 = vmatpush3.msra.mxu1 %v381_v35 }
  0x20   :  { %643 = vmatprep.subr.mxu1 %v380_v36 }
  0x21   :  { %644 = vmatpush3.msra.mxu1 %v380_v36 }
  0x22   :  { %563 = vmatmul.mubr.msk.f32.gmra.mxu0 %vm38_vm0, %v20_v15  ;;  %645 = vmatprep.subr.mxu1 %v379_v37 }
  0x23   :  { %193 = vmatprep.mubr.f32.mxu0 %v742_v3  ;;  %646 = vmatpush3.msra.mxu1 %v379_v37 }
  0x24   :  { %647 = vmatprep.subr.mxu1 %v378_v38 }
  0x25   :  { %648 = vmatpush3.msra.mxu1 %v378_v38 }
  0x26   :  { %564 = vmatmul.mubr.msk.f32.gmra.mxu0 %vm38_vm0, %v21_v16  ;;  %649 = vmatprep.subr.mxu1 %v377_v39 }
  0x27   :  { %199 = vmatprep.mubr.f32.mxu0 %v742_v3  ;;  %650 = vmatpush3.msra.mxu1 %v377_v39 }
  0x28   :  { %651 = vmatprep.subr.mxu1 %v376_v40 }
  0x29   :  { %652 = vmatpush3.msra.mxu1 %v376_v40 }
  0x2a   :  { %565 = vmatmul.mubr.msk.f32.gmra.mxu0 %vm38_vm0, %v22_v17 }
  0x2b   :  { %205 = vmatprep.mubr.f32.mxu0 %v742_v3 }
  0x2e   :  { %566 = vmatmul.mubr.msk.f32.gmra.mxu0 %vm38_vm0, %v23_v18 }
  0x2f   :  { %211 = vmatprep.mubr.f32.mxu0 %v742_v3 }
  0x32   :  { %567 = vmatmul.mubr.msk.f32.gmra.mxu0 %vm38_vm0, %v24_v19 }
  0x33   :  { %217 = vmatprep.mubr.f32.mxu0 %v742_v3 }
  0x36   :  { %568 = vmatmul.mubr.msk.f32.gmra.mxu0 %vm38_vm0, %v25_v20 }
  0x37   :  { %223 = vmatprep.mubr.f32.mxu0 %v742_v3 }
  0x3a   :  { %569 = vmatmul.mubr.msk.f32.gmra.mxu0 %vm38_vm0, %v26_v21 }
  0x3b   :  { %229 = vmatprep.mubr.f32.mxu0 %v742_v3 }
  0x3e   :  { %570 = vmatmul.mubr.msk.f32.gmra.mxu0 %vm38_vm0, %v27_v22 }
  0x3f   :  { %235 = vmatprep.mubr.f32.mxu0 %v742_v3 }
  0x42   :  { %571 = vmatmul.mubr.msk.f32.gmra.mxu0 %vm38_vm0, %v28_v23 }
  0x43   :  { %241 = vmatprep.mubr.f32.mxu0 %v742_v3 }
  0x46   :  { %572 = vmatmul.mubr.msk.f32.gmra.mxu0 %vm38_vm0, %v29_v24 }
  0xca   :  { %v153_v41 = vpop.f32.mrf.mxu0 }
  0xcb   :  { %v573_v42 = vmul.f32 -1.442695, %v153_v41 }
  0xcc   :  { %v155_v43 = vpop.f32.mrf.mxu0 }
  0xcd   :  { %678 = vpow2.f32 %v573_v42 }
  0xce   :  { %v159_v44 = vpop.f32.mrf.mxu0 }
  0xcf   :  { %v574_v45 = vmul.f32 -1.442695, %v159_v44 }
  0xd0   :  { %v161_v46 = vpop.f32.mrf.mxu0 }
  0xd1   :  { %680 = vpow2.f32 %v574_v45 }
  0xd2   :  { %v165_v47 = vpop.f32.mrf.mxu0 }
  0xd3   :  { %v575_v48 = vmul.f32 -1.442695, %v165_v47 }
  0xd4   :  { %v899_v49 = vpop.f32.mrf.mxu0 }
  0xd5   :  { %682 = vpow2.f32 %v575_v48 }
  0xd6   :  { %v901_v50 = vpop.f32.mrf.mxu0 }
  0xd7   :  { %v576_v51 = vmul.f32 -1.442695, %v901_v50 }
  0xd8   :  { %v904_v52 = vpop.f32.mrf.mxu0 }
  0xd9   :  { %684 = vpow2.f32 %v576_v51 }
  0xda   :  { %v679_v53 = vpop.eup %678  ;;  %v906_v54 = vpop.f32.mrf.mxu0 }
  0xdb   :  { %v296_v55 = vadd.f32 1.0, %v679_v53  ;;  %v577_v56 = vmul.f32 -1.442695, %v906_v54 }
  0xdc   :  { %v909_v57 = vpop.f32.mrf.mxu0 }
  0xdd   :  { %686 = vrcp.f32 %v296_v55 }
  0xde   :  { %v681_v58 = vpop.eup %680  ;;  %688 = vpow2.f32 %v577_v56  ;;  %v911_v59 = vpop.f32.mrf.mxu0 }
  0xdf   :  { %v297_v60 = vadd.f32 1.0, %v681_v58  ;;  %v578_v61 = vmul.f32 -1.442695, %v911_v59 }
  0xe0   :  { %v914_v62 = vpop.f32.mrf.mxu0 }
  0xe1   :  { %690 = vrcp.f32 %v297_v60 }
  0xe2   :  { %v683_v63 = vpop.eup %682  ;;  %692 = vpow2.f32 %v578_v61  ;;  %v916_v0 = vpop.f32.mrf.mxu0 }
  0xe3   :  { %v298_v1 = vadd.f32 1.0, %v683_v63  ;;  %v579_v2 = vmul.f32 -1.442695, %v916_v0 }
  0xe4   :  { %v919_v3 = vpop.f32.mrf.mxu0 }
  0xe5   :  { %694 = vrcp.f32 %v298_v1 }
  0xe6   :  { %v685_v4 = vpop.eup %684  ;;  %696 = vpow2.f32 %v579_v2  ;;  %v921_v5 = vpop.f32.mrf.mxu0 }
  0xe7   :  { %v299_v6 = vadd.f32 1.0, %v685_v4  ;;  %v580_v7 = vmul.f32 -1.442695, %v921_v5 }
  0xe8   :  { %v924_v8 = vpop.f32.mrf.mxu0 }
  0xe9   :  { %698 = vrcp.f32 %v299_v6 }
  0xea   :  { %v687_v9 = vpop.eup %686  ;;  %700 = vpow2.f32 %v580_v7  ;;  %v926_v10 = vpop.f32.mrf.mxu0 }
  0xeb   :  { %v689_v11 = vpop.eup %688  ;;  %v344_v12 = vmul.f32 %v687_v9, %v153_v41  ;;  %v581_v13 = vmul.f32 -1.442695, %v926_v10 }
  0xec   :  { %v300_v14 = vadd.f32 1.0, %v689_v11  ;;  %v929_v15 = vpop.f32.mrf.mxu0 }
  0xed   :  { %702 = vpow2.f32 %v581_v13  ;;  %v360_v16 = vmul.f32 %v344_v12, %v155_v43 }
  0xee   :  { %v691_v17 = vpop.eup %690  ;;  %704 = vrcp.f32 %v300_v14  ;;  %v931_v18 = vpop.f32.mrf.mxu0 }
  0xef   :  { %v693_v19 = vpop.eup %692  ;;  %v345_v20 = vmul.f32 %v691_v17, %v159_v44  ;;  %v582_v21 = vmul.f32 -1.442695, %v931_v18  ;;  %653 = vmatprep.mubr.f32.mxu1 %v360_v16 }
  0xf0   :  { %v301_v22 = vadd.f32 1.0, %v693_v19  ;;  %v934_v23 = vpop.f32.mrf.mxu0 }
  0xf1   :  { %v361_v24 = vmul.f32 %v345_v20, %v161_v46  ;;  %706 = vpow2.f32 %v582_v21 }
  0xf2   :  { %v695_v25 = vpop.eup %694  ;;  %708 = vrcp.f32 %v301_v22  ;;  %v936_v26 = vpop.f32.mrf.mxu0 }
  0xf3   :  { %v697_v27 = vpop.eup %696  ;;  %v346_v28 = vmul.f32 %v695_v25, %v165_v47  ;;  %v583_v29 = vmul.f32 -1.442695, %v936_v26  ;;  %654 = vmatmul.mubr.f32.vlgmr.msra.gmra.mxu1 %v361_v24 }
  0xf4   :  { %v302_v30 = vadd.f32 1.0, %v697_v27  ;;  %v939_v31 = vpop.f32.mrf.mxu0 }
  0xf5   :  { %v362_v32 = vmul.f32 %v346_v28, %v899_v49  ;;  %710 = vpow2.f32 %v583_v29 }
  0xf6   :  { %v699_v33 = vpop.eup %698  ;;  %712 = vrcp.f32 %v302_v30  ;;  %v942_v34 = vpop.f32.mrf.mxu0 }
  0xf7   :  { %v701_v35 = vpop.eup %700  ;;  %v347_v36 = vmul.f32 %v699_v33, %v901_v50  ;;  %v584_v37 = vmul.f32 -1.442695, %v942_v34  ;;  %656 = vmatprep.mubr.f32.mxu1 %v362_v32 }
  0xf8   :  { %v303_v38 = vadd.f32 1.0, %v701_v35  ;;  %v946_v39 = vpop.f32.mrf.mxu0 }
  0xf9   :  { %v363_v40 = vmul.f32 %v347_v36, %v904_v52  ;;  %714 = vpow2.f32 %v584_v37 }
  0xfa   :  { %v703_v41 = vpop.eup %702  ;;  %716 = vrcp.f32 %v303_v38  ;;  %v949_v42 = vpop.f32.mrf.mxu0 }
  0xfb   :  { %v705_v43 = vpop.eup %704  ;;  %v304_v44 = vadd.f32 1.0, %v703_v41  ;;  %v585_v45 = vmul.f32 -1.442695, %v949_v42  ;;  %657 = vmatmul.mubr.f32.gmra.mxu1 %v363_v40 }
  0xfc   :  { %v348_v46 = vmul.f32 %v705_v43, %v906_v54  ;;  %v953_v47 = vpop.f32.mrf.mxu0 }
  0xfd   :  { %718 = vrcp.f32 %v304_v44 }
  0xfe   :  { %v707_v48 = vpop.eup %706  ;;  %v364_v49 = vmul.f32 %v348_v46, %v909_v57  ;;  %720 = vpow2.f32 %v585_v45  ;;  %v956_v50 = vpop.f32.mrf.mxu0 }
  0xff   :  { %v709_v51 = vpop.eup %708  ;;  %v305_v52 = vadd.f32 1.0, %v707_v48  ;;  %v586_v53 = vmul.f32 -1.442695, %v956_v50 }
 0x100   :  { %v349_v55 = vmul.f32 %v709_v51, %v911_v59  ;;  %659 = vmatprep.mubr.f32.mxu1 %v364_v49  ;;  %v233_v56 = vpop.f32.mrf.mxu0 }
 0x101   :  { %722 = vrcp.f32 %v305_v52 }
 0x102   :  { %v711_v58 = vpop.eup %710  ;;  %v365_v54 = vmul.f32 %v349_v55, %v914_v62  ;;  %724 = vpow2.f32 %v586_v53  ;;  %v237_v60 = vpop.f32.mrf.mxu0 }
 0x103   :  { %v713_v61 = vpop.eup %712  ;;  %v306_v63 = vadd.f32 1.0, %v711_v58  ;;  %v587_v57 = vmul.f32 -1.442695, %v237_v60 }
 0x104   :  { %v350_v1 = vmul.f32 %v713_v61, %v916_v0  ;;  %660 = vmatmul.mubr.f32.gmra.mxu1 %v365_v54  ;;  %v239_v2 = vpop.f32.mrf.mxu0 }
 0x105   :  { %726 = vrcp.f32 %v306_v63 }
 0x106   :  { %v715_v4 = vpop.eup %714  ;;  %v366_v6 = vmul.f32 %v350_v1, %v919_v3  ;;  %728 = vpow2.f32 %v587_v57  ;;  %v243_v59 = vpop.f32.mrf.mxu0 }
 0x107   :  { %v717_v7 = vpop.eup %716  ;;  %v307_v9 = vadd.f32 1.0, %v715_v4  ;;  %v588_v11 = vmul.f32 -1.442695, %v243_v59 }
 0x108   :  { %v351_v62 = vmul.f32 %v717_v7, %v921_v5  ;;  %662 = vmatprep.mubr.f32.mxu1 %v366_v6 }
 0x109   :  { %730 = vrcp.f32 %v307_v9 }
 0x10a   :  { %v719_v12 = vpop.eup %718  ;;  %v367_v13 = vmul.f32 %v351_v62, %v924_v8  ;;  %732 = vpow2.f32 %v588_v11 }
 0x10b   :  { %v721_v0 = vpop.eup %720  ;;  %v352_v14 = vmul.f32 %v719_v12, %v926_v10 }
 0x10c   :  { %v308_v16 = vadd.f32 1.0, %v721_v0  ;;  %663 = vmatmul.mubr.f32.gmra.mxu1 %v367_v13 }
 0x10d   :  { %v368_v3 = vmul.f32 %v352_v14, %v929_v15 }
 0x10e   :  { %v723_v17 = vpop.eup %722  ;;  %734 = vrcp.f32 %v308_v16 }
 0x10f   :  { %v725_v19 = vpop.eup %724  ;;  %v353_v20 = vmul.f32 %v723_v17, %v931_v18  ;;  %665 = vmatprep.mubr.f32.mxu1 %v368_v3 }
 0x110   :  { %v309_v5 = vadd.f32 1.0, %v725_v19 }
 0x111   :  { %v369_v21 = vmul.f32 %v353_v20, %v934_v23 }
 0x112   :  { %v727_v22 = vpop.eup %726  ;;  %736 = vrcp.f32 %v309_v5 }
 0x113   :  { %v729_v8 = vpop.eup %728  ;;  %v354_v24 = vmul.f32 %v727_v22, %v936_v26  ;;  %666 = vmatmul.mubr.f32.gmra.mxu1 %v369_v21 }
 0x114   :  { %v310_v10 = vadd.f32 1.0, %v729_v8 }
 0x115   :  { %v370_v25 = vmul.f32 %v354_v24, %v939_v31 }
 0x116   :  { %v731_v27 = vpop.eup %730  ;;  %738 = vrcp.f32 %v310_v10 }
 0x117   :  { %v733_v15 = vpop.eup %732  ;;  %v355_v28 = vmul.f32 %v731_v27, %v942_v34  ;;  %668 = vmatprep.mubr.f32.mxu1 %v370_v25 }
 0x118   :  { %v311_v18 = vadd.f32 1.0, %v733_v15 }
 0x119   :  { %v371_v29 = vmul.f32 %v355_v28, %v946_v39  ;;  %v245_v39 = vpop.f32.mrf.mxu0 }
 0x11a   :  { %740 = vrcp.f32 %v311_v18 }
 0x11b   :  { %v735_v23 = vpop.eup %734  ;;  %669 = vmatmul.mubr.f32.gmra.mxu1 %v371_v29 }
 0x11c   :  { %v356_v30 = vmul.f32 %v735_v23, %v949_v42 }
 0x11e   :  { %v372_v26 = vmul.f32 %v356_v30, %v953_v47 }
 0x11f   :  { %v737_v32 = vpop.eup %736 }
 0x120   :  { %v357_v33 = vmul.f32 %v737_v32, %v956_v50  ;;  %671 = vmatprep.mubr.f32.mxu1 %v372_v26 }
 0x122   :  { %v373_v31 = vmul.f32 %v357_v33, %v233_v56 }
 0x123   :  { %v739_v35 = vpop.eup %738 }
 0x124   :  { %v358_v36 = vmul.f32 %v739_v35, %v237_v60  ;;  %672 = vmatmul.mubr.f32.gmra.mxu1 %v373_v31 }
 0x126   :  { %v374_v34 = vmul.f32 %v358_v36, %v239_v2 }
 0x127   :  { %v741_v37 = vpop.eup %740 }
 0x128   :  { %v359_v38 = vmul.f32 %v741_v37, %v243_v59  ;;  %674 = vmatprep.mubr.f32.mxu1 %v374_v34 }
 0x12a   :  { %v375_v40 = vmul.f32 %v359_v38, %v245_v39 }
 0x12c   :  { %675 = vmatmul.mubr.f32.gmra.mxu1 %v375_v40 }
 0x1b3   :  { %v655_v41 = vpop.f32.mrf.mxu1 }
 0x1b4   :  { %538 = vst.msk [vmem:[%s1043_s3 + $0x8] sm:$0xff] %vm38_vm0, %v655_v41 }
 0x1b5   :  { %v458_v42 = vpop.f32.mrf.mxu1 }
 0x1b6   :  { %537 = vst.msk [vmem:[%s1043_s3] sm:$0xff] %vm38_vm0, %v458_v42 }
 0x1bb   :  { %v658_v43 = vpop.f32.mrf.mxu1 }
 0x1bc   :  { %540 = vst.msk [vmem:[%s1043_s3 + $0x18] sm:$0xff] %vm38_vm0, %v658_v43 }
 0x1bd   :  { %v468_v44 = vpop.f32.mrf.mxu1 }
 0x1be   :  { %539 = vst.msk [vmem:[%s1043_s3 + $0x10] sm:$0xff] %vm38_vm0, %v468_v44 }
 0x1c4   :  { %v661_v45 = vpop.f32.mrf.mxu1 }
 0x1c5   :  { %542 = vst.msk [vmem:[%s1043_s3 + $0x28] sm:$0xff] %vm38_vm0, %v661_v45 }
 0x1c6   :  { %v478_v46 = vpop.f32.mrf.mxu1 }
 0x1c7   :  { %541 = vst.msk [vmem:[%s1043_s3 + $0x20] sm:$0xff] %vm38_vm0, %v478_v46 }
 0x1cc   :  { %v664_v47 = vpop.f32.mrf.mxu1 }
 0x1cd   :  { %544 = vst.msk [vmem:[%s1043_s3 + $0x38] sm:$0xff] %vm38_vm0, %v664_v47 }
 0x1ce   :  { %v488_v48 = vpop.f32.mrf.mxu1 }
 0x1cf   :  { %543 = vst.msk [vmem:[%s1043_s3 + $0x30] sm:$0xff] %vm38_vm0, %v488_v48 }
 0x1d3   :  { %v667_v49 = vpop.f32.mrf.mxu1 }
 0x1d4   :  { %546 = vst.msk [vmem:[%s1043_s3 + $0x48] sm:$0xff] %vm38_vm0, %v667_v49 }
 0x1d5   :  { %v498_v50 = vpop.f32.mrf.mxu1 }
 0x1d6   :  { %545 = vst.msk [vmem:[%s1043_s3 + $0x40] sm:$0xff] %vm38_vm0, %v498_v50 }
 0x1db   :  { %v670_v51 = vpop.f32.mrf.mxu1 }
 0x1dc   :  { %548 = vst.msk [vmem:[%s1043_s3 + $0x58] sm:$0xff] %vm38_vm0, %v670_v51 }
 0x1dd   :  { %v508_v52 = vpop.f32.mrf.mxu1 }
 0x1de   :  { %547 = vst.msk [vmem:[%s1043_s3 + $0x50] sm:$0xff] %vm38_vm0, %v508_v52 }
 0x1e4   :  { %v673_v53 = vpop.f32.mrf.mxu1 }
 0x1e5   :  { %550 = vst.msk [vmem:[%s1043_s3 + $0x68] sm:$0xff] %vm38_vm0, %v673_v53 }
 0x1e6   :  { %v518_v55 = vpop.f32.mrf.mxu1 }
 0x1e7   :  { %549 = vst.msk [vmem:[%s1043_s3 + $0x60] sm:$0xff] %vm38_vm0, %v518_v55 }
 0x1ec   :  { %v676_v56 = vpop.f32.mrf.mxu1 }
 0x1ed   :  { %552 = vst.msk [vmem:[%s1043_s3 + $0x78] sm:$0xff] %vm38_vm0, %v676_v56 }
 0x1ee   :  { %v528_v58 = vpop.f32.mrf.mxu1 }
 0x1ef   :  { %551 = vst.msk [vmem:[%s1043_s3 + $0x70] sm:$0xff] %vm38_vm0, %v528_v58 }

</bundles_post_ra>
